<compile_context>
chip_gen: v6e
topology: v6e:2x2x1
jax: 0.10.0
libtpu: 0.0.40
codegen_flags: <defaults>
</compile_context>

<pallas_src>
import functools

import jax
import jax.numpy as jnp
from jax.experimental import pallas as pl
from jax.experimental.pallas import tpu as pltpu


def _round_up(x, m):
    return ((x + m - 1) // m) * m


def _cdiv(a, b):
    return (a + b - 1) // b


# ------------------------------ kernel 1: XW -------------------------------- #
def xw_kernel(x_ref, w_ref, o_ref):
    # bf16 X tile @ bf16 W -> f32 accumulate -> bf16 store (feeds aggregation matmul)
    o_ref[...] = jnp.dot(
        x_ref[...], w_ref[...], preferred_element_type=jnp.float32
    ).astype(o_ref.dtype)


# --------------------- kernel 2: tiled aggregation + head ------------------- #
def gcn_agg_kernel(a_ref, xw_ref, b_ref, emb_ref, logp_ref, *,
                   h_valid, tk, xw_resident):
    k = pl.program_id(1)

    # emb_ref (f32, resident across k) doubles as the accumulator.
    @pl.when(k == 0)
    def _():
        emb_ref[...] = jnp.zeros_like(emb_ref)

    if xw_resident:
        # Full XW lives in VMEM (DMA'd once); slice the k-th row block.
        start = pl.multiple_of(k * tk, tk)
        xw_tile = xw_ref[pl.ds(start, tk), :]
    else:
        xw_tile = xw_ref[...]

    # A_hat tile (bf16) @ XW tile (bf16), accumulate in f32 directly in the output.
    emb_ref[...] += jnp.dot(a_ref[...], xw_tile, preferred_element_type=jnp.float32)

    @pl.when(k == pl.num_programs(1) - 1)
    def _():
        h = emb_ref[...] + b_ref[...]                  # bias (f32 epilogue)
        emb_ref[...] = h                               # emb = pre-activation (+ bias)
        r = jnp.maximum(h, 0.0)                        # relu; dropout = identity (eval)
        # numerically stable log_softmax over the VALID H columns only
        col = jax.lax.broadcasted_iota(jnp.int32, r.shape, 1)
        valid = col < h_valid
        m = jnp.max(jnp.where(valid, r, -1e30), axis=1, keepdims=True)
        s = r - m
        p = jnp.where(valid, jnp.exp(s), 0.0)
        lse = jnp.log(jnp.sum(p, axis=1, keepdims=True))
        logp_ref[...] = (s - lse).astype(logp_ref.dtype)


# --------------------------------- wrapper ---------------------------------- #
@jax.jit
def gcn_stack_forward(x, edge_index, weight, bias):
    """x: [N, F_in] f32, edge_index: [2, E] int32, weight: [F_in, H], bias: [H]."""
    N, F_in = x.shape
    H = weight.shape[1]

    # ---- tile selection: bounded padding, >=2 row tiles (v7x megacore) ----
    TILE_TARGET = 1024
    n_row_tiles = max(_cdiv(N, TILE_TARGET), 2)       # both TensorCores get work
    TM = _round_up(_cdiv(N, n_row_tiles), 16)         # bf16 sublane packing
    N_rows = n_row_tiles * TM

    n_col_tiles = max(_cdiv(N, TILE_TARGET), 1)
    TK = _round_up(_cdiv(N, n_col_tiles), 128)        # lane alignment
    N_cols = n_col_tiles * TK

    H_pad = _round_up(H, 128)                         # lane-dense outputs / XW
    F_pad = _round_up(F_in, 128)

    # ---- VMEM budgeting: can XW be fully VMEM-resident in kernel 2? ----
    VMEM_CAP = 48 * 1024 * 1024                       # below physical on v5e/v6e/v7x
    a_bufs = 3 if n_col_tiles >= 3 else 2
    fixed_bytes = (a_bufs * TM * TK * 2               # bf16 A_hat tiles (multi-buffered)
                   + 2 * 2 * TM * H_pad * 4           # two f32 outputs, double-buffered
                   + 2 * H_pad * 4)                   # bias
    xw_full_bytes = N_cols * H_pad * 2                # bf16
    xw_resident = (fixed_bytes + 2 * xw_full_bytes) <= int(0.75 * VMEM_CAP)
    k2_bytes = fixed_bytes + (2 * xw_full_bytes if xw_resident
                              else 2 * 2 * TK * H_pad * 2)
    vmem_limit2 = max(32 * 1024 * 1024, min(VMEM_CAP, k2_bytes + (8 << 20)))

    # --- glue: dense normalized adjacency with self-loops (PyG gcn_norm) ---
    src = edge_index[0]
    dst = edge_index[1]
    self_idx = jnp.arange(N, dtype=edge_index.dtype)
    src = jnp.concatenate([src, self_idx])
    dst = jnp.concatenate([dst, self_idx])
    ones = jnp.ones(src.shape[0], dtype=jnp.float32)
    deg = jnp.zeros((N,), jnp.float32).at[dst].add(ones)   # in-degree incl. self-loop
    dinv = jnp.where(deg > 0, 1.0 / jnp.sqrt(deg), 0.0)
    norm = (dinv[src] * dinv[dst]).astype(jnp.bfloat16)
    # Build A_hat directly in bf16: no extra N^2 f32 materialize + cast pass.
    a_hat = jnp.zeros((N_rows, N_cols), jnp.bfloat16).at[dst, src].add(norm)

    # zero-padded bf16 operands for kernel 1 (padding is mathematically inert:
    # padded X/W rows/cols, A_hat rows/cols and bias entries are all zero)
    x_pad = jnp.zeros((N_cols, F_pad), jnp.bfloat16).at[:N, :F_in].set(
        x.astype(jnp.bfloat16))
    w_pad = jnp.zeros((F_pad, H_pad), jnp.bfloat16).at[:F_in, :H].set(
        weight.astype(jnp.bfloat16))
    b_pad = jnp.zeros((1, H_pad), jnp.float32).at[0, :H].set(
        bias.astype(jnp.float32))

    # --- kernel 1: XW computed once (not redone per aggregation grid step) ---
    xw = pl.pallas_call(
        xw_kernel,
        out_shape=jax.ShapeDtypeStruct((N_cols, H_pad), jnp.bfloat16),
        grid_spec=pltpu.PrefetchScalarGridSpec(
            num_scalar_prefetch=0,
            grid=(n_col_tiles,),
            in_specs=[
                pl.BlockSpec((TK, F_pad), lambda i: (i, 0)),
                pl.BlockSpec((F_pad, H_pad), lambda i: (0, 0)),
            ],
            out_specs=pl.BlockSpec((TK, H_pad), lambda i: (i, 0)),
        ),
        compiler_params=pltpu.CompilerParams(
            dimension_semantics=("parallel",),
            vmem_limit_bytes=32 * 1024 * 1024,
        ),
    )(x_pad, w_pad)

    # --- kernel 2: tiled A_hat @ XW + bias + relu + masked log_softmax ---
    a_spec = pl.BlockSpec((TM, TK), lambda i, k: (i, k))
    if n_col_tiles >= 3:
        # Deep reduction grid: keep two A_hat DMAs in flight on the HBM read stream.
        try:
            a_spec = pl.BlockSpec((TM, TK), lambda i, k: (i, k),
                                  pipeline_mode=pl.Buffered(3))
        except TypeError:
            pass  # older jax without pipeline_mode: fall back to double buffering

    if xw_resident:
        # Constant block index => DMA'd once, stays resident in VMEM across the grid.
        xw_spec = pl.BlockSpec((N_cols, H_pad), lambda i, k: (0, 0))
    else:
        xw_spec = pl.BlockSpec((TK, H_pad), lambda i, k: (k, 0))

    grid = (n_row_tiles, n_col_tiles)
    emb_pad, logp_pad = pl.pallas_call(
        functools.partial(gcn_agg_kernel, h_valid=H, tk=TK,
                          xw_resident=xw_resident),
        out_shape=(
            jax.ShapeDtypeStruct((N_rows, H_pad), jnp.float32),
            jax.ShapeDtypeStruct((N_rows, H_pad), jnp.float32),
        ),
        grid_spec=pltpu.PrefetchScalarGridSpec(
            num_scalar_prefetch=0,
            grid=grid,
            in_specs=[
                a_spec,                                        # A_hat tile (bf16)
                xw_spec,                                       # XW (resident or tiled)
                pl.BlockSpec((1, H_pad), lambda i, k: (0, 0)),  # bias
            ],
            out_specs=(
                pl.BlockSpec((TM, H_pad), lambda i, k: (i, 0)),  # emb (resident over k)
                pl.BlockSpec((TM, H_pad), lambda i, k: (i, 0)),  # log_probs
            ),
        ),
        compiler_params=pltpu.CompilerParams(
            dimension_semantics=("parallel", "arbitrary"),
            vmem_limit_bytes=vmem_limit2,
        ),
    )(a_hat, xw, b_pad)

    return emb_pad[:N, :H], logp_pad[:N, :H]


# --------------------------- pure-JAX reference ------------------------------ #
def _reference(x, edge_index, weight, bias):
    N = x.shape[0]
    src, dst = edge_index[0], edge_index[1]
    self_idx = jnp.arange(N, dtype=edge_index.dtype)
    src = jnp.concatenate([src, self_idx])
    dst = jnp.concatenate([dst, self_idx])
    deg = jnp.zeros((N,), jnp.float32).at[dst].add(jnp.ones(src.shape[0], jnp.float32))
    dinv = jnp.where(deg > 0, 1.0 / jnp.sqrt(deg), 0.0)
    a = jnp.zeros((N, N), jnp.float32).at[dst, src].add(dinv[src] * dinv[dst])
    h = a @ (x @ weight) + bias
    r = jnp.maximum(h, 0.0)
    return h, jax.nn.log_softmax(r, axis=1)


if __name__ == "__main__":
    key = jax.random.PRNGKey(0)
    k_x, k_e, k_w, k_b = jax.random.split(key, 4)

    N = 64          # number of graph nodes
    F_IN = 16       # input_dim
    H = 32          # hidden_dim1
    E = 128         # number of (directed) edges

    # deterministic synthetic inputs
    x = jax.random.normal(k_x, (N, F_IN), dtype=jnp.float32)
    edge_index = jax.random.randint(k_e, (2, E), 0, N, dtype=jnp.int32)

    # deterministic parameters (GCNConv lin.weight stored transposed [F_IN, H], bias [H])
    glorot = (6.0 / (F_IN + H)) ** 0.5
    weight = jax.random.uniform(k_w, (F_IN, H), jnp.float32, -glorot, glorot)
    bias = jax.random.uniform(k_b, (H,), jnp.float32, -0.1, 0.1)

    # TODO(synk): dropout (p=0.5) applies only in training mode; eval-mode forward only.
    emb, log_probs = gcn_stack_forward(x, edge_index, weight, bias)
    jax.block_until_ready((emb, log_probs))

    assert emb.shape == (N, H) and log_probs.shape == (N, H)
    # rows of log_softmax must sum (in prob space) to 1
    assert bool(jnp.allclose(jnp.sum(jnp.exp(log_probs), axis=1), 1.0, atol=1e-4))

    # compare against pure-JAX f32 reference (loose tol: bf16 A_hat / X / W operands)
    emb_ref, logp_ref = _reference(x, edge_index, weight, bias)
    assert bool(jnp.allclose(emb, emb_ref, atol=1e-1, rtol=1e-1))
    assert bool(jnp.allclose(log_probs, logp_ref, atol=1e-1, rtol=1e-1))

    print("KERNEL_OK")
</pallas_src>

<mosaic_0001>
module attributes {stable_mosaic.version = 11 : i64} {
  func.func private @main(%arg0: i32) attributes {dimension_semantics = [#tpu.dimension_semantics<core_parallel>], iteration_bounds = array<i64: 2>, tpu.core_type = #tpu.core_type<sc_scalar_subcore>, window_params = []} {
    return
  }
}

module attributes {stable_mosaic.version = 11 : i64} {
  func.func private @main(%arg0: i32) attributes {dimension_semantics = [#tpu.dimension_semantics<core_parallel>], iteration_bounds = array<i64: 2>, tpu.core_type = #tpu.core_type<sc_scalar_subcore>, window_params = []} {
    return
  }
}

module attributes {stable_mosaic.version = 11 : i64} {
  func.func @xw_kernel(%arg0: i32, %arg1: memref<128x128xbf16, #tpu.memory_space<vmem>>, %arg2: memref<128x128xbf16, #tpu.memory_space<vmem>>, %arg3: memref<128x128xbf16, #tpu.memory_space<vmem>>) attributes {dimension_semantics = [#tpu.dimension_semantics<parallel>], iteration_bounds = array<i64: 1>, scalar_prefetch = 0 : i64, scratch_operands = 0 : i64, tpu.core_type = #tpu.core_type<tc>, window_params = [{transform_indices = @transform_0, window_bounds = array<i64: 128, 128>}, {pipeline_mode = #tpu.pipeline_mode<synchronous>, transform_indices = @transform_1, window_bounds = array<i64: 128, 128>}, {transform_indices = @transform_2, window_bounds = array<i64: 128, 128>}]} {
    %c0 = arith.constant 0 : index
    %c0_0 = arith.constant 0 : index
    %0 = vector.load %arg1[%c0, %c0_0] : memref<128x128xbf16, #tpu.memory_space<vmem>>, vector<128x128xbf16>
    %c0_1 = arith.constant 0 : index
    %c0_2 = arith.constant 0 : index
    %1 = vector.load %arg2[%c0_1, %c0_2] : memref<128x128xbf16, #tpu.memory_space<vmem>>, vector<128x128xbf16>
    %cst = arith.constant dense<0.000000e+00> : vector<128x128xf32>
    %2 = tpu.matmul %0, %1, %cst {dimension_numbers = #tpu.dot_dimension_numbers<[1], [0], [0], [1], [0, 0, 1, 1], [], []>} : vector<128x128xbf16>, vector<128x128xbf16>, vector<128x128xf32> -> vector<128x128xf32>
    %3 = arith.truncf %2 : vector<128x128xf32> to vector<128x128xbf16>
    %c0_3 = arith.constant 0 : index
    %c0_4 = arith.constant 0 : index
    %4 = vector.load %arg3[%c0_3, %c0_4] : memref<128x128xbf16, #tpu.memory_space<vmem>>, vector<128x128xbf16>
    tpu.vector_store %arg3[%c0_3, %c0_4], %3 {strides = array<i32>} : memref<128x128xbf16, #tpu.memory_space<vmem>>, vector<128x128xbf16>,
    return
  }
  func.func @transform_0(%arg0: i32) -> (i32, i32) {
    %c0_i32 = arith.constant 0 : i32
    %c0_i32_0 = arith.constant 0 : i32
    return %arg0, %c0_i32 : i32, i32
  }
  func.func @transform_1(%arg0: i32) -> (i32, i32) {
    %c0_i32 = arith.constant 0 : i32
    %c0_i32_0 = arith.constant 0 : i32
    %c0_i32_1 = arith.constant 0 : i32
    return %c0_i32, %c0_i32_0 : i32, i32
  }
  func.func @transform_2(%arg0: i32) -> (i32, i32) {
    %c0_i32 = arith.constant 0 : i32
    %c0_i32_0 = arith.constant 0 : i32
    return %arg0, %c0_i32 : i32, i32
  }
}

module attributes {stable_mosaic.version = 11 : i64} {
  func.func @gcn_agg_kernel(%arg0: i32, %arg1: i32, %arg2: memref<32x128xbf16, #tpu.memory_space<vmem>>, %arg3: memref<128x128xbf16, #tpu.memory_space<vmem>>, %arg4: memref<1x128xf32, #tpu.memory_space<vmem>>, %arg5: memref<32x128xf32, #tpu.memory_space<vmem>>, %arg6: memref<32x128xf32, #tpu.memory_space<vmem>>) attributes {dimension_semantics = [#tpu.dimension_semantics<parallel>, #tpu.dimension_semantics<arbitrary>], iteration_bounds = array<i64: 2, 1>, scalar_prefetch = 0 : i64, scratch_operands = 0 : i64, tpu.core_type = #tpu.core_type<tc>, window_params = [{transform_indices = @transform_0, window_bounds = array<i64: 32, 128>}, {pipeline_mode = #tpu.pipeline_mode<synchronous>, transform_indices = @transform_1, window_bounds = array<i64: 128, 128>}, {pipeline_mode = #tpu.pipeline_mode<synchronous>, transform_indices = @transform_2, window_bounds = array<i64: 1, 128>}, {transform_indices = @transform_3, window_bounds = array<i64: 32, 128>}, {transform_indices = @transform_4, window_bounds = array<i64: 32, 128>}]} {
    %c0_i32 = arith.constant 0 : i32
    %0 = arith.cmpi eq, %arg1, %c0_i32 : i32
    %1 = arith.extui %0 : i1 to i32
    %c0_i32_0 = arith.constant 0 : i32
    %2 = arith.cmpi ne, %1, %c0_i32_0 : i32
    scf.if %2 {
      %cst_9 = arith.constant 0.000000e+00 : f32
      %15 = vector.broadcast %cst_9 : f32 to vector<32x128xf32>
      %c0_10 = arith.constant 0 : index
      %c0_11 = arith.constant 0 : index
      %16 = vector.load %arg5[%c0_10, %c0_11] : memref<32x128xf32, #tpu.memory_space<vmem>>, vector<32x128xf32>
      tpu.vector_store %arg5[%c0_10, %c0_11], %15 {strides = array<i32>} : memref<32x128xf32, #tpu.memory_space<vmem>>, vector<32x128xf32>,
    } else {
    }
    %c128_i32 = arith.constant 128 : i32
    %3 = arith.muli %arg1, %c128_i32 : i32
    %4 = tpu.assume_multiple %3, 128 : i32
    %5 = arith.index_cast %4 : i32 to index
    %c0 = arith.constant 0 : index
    %6 = vector.load %arg3[%5, %c0] : memref<128x128xbf16, #tpu.memory_space<vmem>>, vector<128x128xbf16>
    %c0_1 = arith.constant 0 : index
    %c0_2 = arith.constant 0 : index
    %7 = vector.load %arg5[%c0_1, %c0_2] : memref<32x128xf32, #tpu.memory_space<vmem>>, vector<32x128xf32>
    %c0_3 = arith.constant 0 : index
    %c0_4 = arith.constant 0 : index
    %8 = vector.load %arg2[%c0_3, %c0_4] : memref<32x128xbf16, #tpu.memory_space<vmem>>, vector<32x128xbf16>
    %cst = arith.constant dense<0.000000e+00> : vector<32x128xf32>
    %9 = tpu.matmul %8, %6, %cst {dimension_numbers = #tpu.dot_dimension_numbers<[1], [0], [0], [1], [0, 0, 1, 1], [], []>} : vector<32x128xbf16>, vector<128x128xbf16>, vector<32x128xf32> -> vector<32x128xf32>
    %10 = arith.addf %7, %9 : vector<32x128xf32>
    %c0_5 = arith.constant 0 : index
    %c0_6 = arith.constant 0 : index
    %11 = vector.load %arg5[%c0_5, %c0_6] : memref<32x128xf32, #tpu.memory_space<vmem>>, vector<32x128xf32>
    tpu.vector_store %arg5[%c0_5, %c0_6], %10 {strides = array<i32>} : memref<32x128xf32, #tpu.memory_space<vmem>>, vector<32x128xf32>,
    %c0_i32_7 = arith.constant 0 : i32
    %12 = arith.cmpi eq, %arg1, %c0_i32_7 : i32
    %13 = arith.extui %12 : i1 to i32
    %c0_i32_8 = arith.constant 0 : i32
    %14 = arith.cmpi ne, %13, %c0_i32_8 : i32
    scf.if %14 {
      %c0_9 = arith.constant 0 : index
      %c0_10 = arith.constant 0 : index
      %15 = vector.load %arg5[%c0_9, %c0_10] : memref<32x128xf32, #tpu.memory_space<vmem>>, vector<32x128xf32>
      %c0_11 = arith.constant 0 : index
      %c0_12 = arith.constant 0 : index
      %16 = vector.load %arg4[%c0_11, %c0_12] : memref<1x128xf32, #tpu.memory_space<vmem>>, vector<1x128xf32>
      %17 = vector.broadcast %16 : vector<1x128xf32> to vector<32x128xf32>
      %18 = arith.addf %15, %17 : vector<32x128xf32>
      %c0_13 = arith.constant 0 : index
      %c0_14 = arith.constant 0 : index
      %19 = vector.load %arg5[%c0_13, %c0_14] : memref<32x128xf32, #tpu.memory_space<vmem>>, vector<32x128xf32>
      tpu.vector_store %arg5[%c0_13, %c0_14], %18 {strides = array<i32>} : memref<32x128xf32, #tpu.memory_space<vmem>>, vector<32x128xf32>,
      %cst_15 = arith.constant 0.000000e+00 : f32
      %20 = vector.broadcast %cst_15 : f32 to vector<32x128xf32>
      %21 = arith.maximumf %18, %20 : vector<32x128xf32>
      %22 = tpu.iota {dimensions = array<i32: 1>} : vector<32x128xi32>
      %c32_i32 = arith.constant 32 : i32
      %23 = vector.broadcast %c32_i32 : i32 to vector<32x128xi32>
      %24 = arith.cmpi slt, %22, %23 : vector<32x128xi32>
      %cst_16 = arith.constant -1.000000e+30 : f32
      %25 = vector.broadcast %cst_16 : f32 to vector<32x128xf32>
      %26 = arith.select %24, %21, %25 : vector<32x128xi1>, vector<32x128xf32>
      %cst_17 = arith.constant dense<0xFF800000> : vector<32xf32>
      %27 = vector.multi_reduction <maximumf>, %26, %cst_17 [1] : vector<32x128xf32> to vector<32xf32>
      %28 = vector.shape_cast %27 : vector<32xf32> to vector<32x1xf32>
      %29 = vector.broadcast %28 : vector<32x1xf32> to vector<32x128xf32>
      %30 = arith.subf %21, %29 : vector<32x128xf32>
      %31 = math.exp %30 : vector<32x128xf32>
      %cst_18 = arith.constant 0.000000e+00 : f32
      %32 = vector.broadcast %cst_18 : f32 to vector<32x128xf32>
      %33 = arith.select %24, %31, %32 : vector<32x128xi1>, vector<32x128xf32>
      %cst_19 = arith.constant dense<0.000000e+00> : vector<32xf32>
      %34 = vector.multi_reduction <add>, %33, %cst_19 [1] : vector<32x128xf32> to vector<32xf32>
      %35 = vector.shape_cast %34 : vector<32xf32> to vector<32x1xf32>
      %36 = math.log %35 : vector<32x1xf32>
      %37 = vector.broadcast %36 : vector<32x1xf32> to vector<32x128xf32>
      %38 = arith.subf %30, %37 : vector<32x128xf32>
      %c0_20 = arith.constant 0 : index
      %c0_21 = arith.constant 0 : index
      %39 = vector.load %arg6[%c0_20, %c0_21] : memref<32x128xf32, #tpu.memory_space<vmem>>, vector<32x128xf32>
      tpu.vector_store %arg6[%c0_20, %c0_21], %38 {strides = array<i32>} : memref<32x128xf32, #tpu.memory_space<vmem>>, vector<32x128xf32>,
    } else {
    }
    return
  }
  func.func @transform_0(%arg0: i32, %arg1: i32) -> (i32, i32) {
    %c0_i32 = arith.constant 0 : i32
    return %arg0, %arg1 : i32, i32
  }
  func.func @transform_1(%arg0: i32, %arg1: i32) -> (i32, i32) {
    %c0_i32 = arith.constant 0 : i32
    %c0_i32_0 = arith.constant 0 : i32
    %c0_i32_1 = arith.constant 0 : i32
    return %c0_i32, %c0_i32_0 : i32, i32
  }
  func.func @transform_2(%arg0: i32, %arg1: i32) -> (i32, i32) {
    %c0_i32 = arith.constant 0 : i32
    %c0_i32_0 = arith.constant 0 : i32
    %c0_i32_1 = arith.constant 0 : i32
    return %c0_i32, %c0_i32_0 : i32, i32
  }
  func.func @transform_3(%arg0: i32, %arg1: i32) -> (i32, i32) {
    %c0_i32 = arith.constant 0 : i32
    %c0_i32_0 = arith.constant 0 : i32
    return %arg0, %c0_i32 : i32, i32
  }
  func.func @transform_4(%arg0: i32, %arg1: i32) -> (i32, i32) {
    %c0_i32 = arith.constant 0 : i32
    %c0_i32_0 = arith.constant 0 : i32
    return %arg0, %c0_i32 : i32, i32
  }
}

</mosaic_0001>

<bundles_post_ra>
// kernel: gcn_stack_forward.2
= control target key start
LH: loop header
LB: loop body
LE: loop exit
PB: predicated region body
PF: predicated region fallthrough
CT: control target
= control target key end

     0   :  { %s583_s1 = inlined_call_operand.vmem [shape: bf16[128,128], index: 1, kind: input, shape index: {}]   ;;  %s584_s0 = inlined_call_operand.vmem [shape: bf16[128,128], index: 0, kind: input, shape index: {}]   ;;  %s585_s2 = inlined_call_operand.vmem [shape: bf16[128,128], index: 2, kind: output, shape index: {}]  }
   0x1   :  { %v480_v0 = vld [vmem:[%s583_s1 + $0x38] sm:$0xff]   ;;  %v481_v1 = vld [vmem:[%s583_s1 + $0x30] sm:$0xff]   ;;  %v482_v2 = vld [vmem:[%s583_s1 + $0x28] sm:$0xff]  }
   0x2   :  { %432 = vmatprep.subr.bf16.mxu0 %v480_v0  ;;  %464 = vmatprep.subr.bf16.mxu1 %v480_v0  ;;  %v483_v3 = vld [vmem:[%s583_s1 + $0x20] sm:$0xff]   ;;  %v484_v6 = vld [vmem:[%s583_s1 + $0x18] sm:$0xff]   ;;  %v485_v7 = vld [vmem:[%s583_s1 + $0x10] sm:$0xff]  }
   0x3   :  { %433 = vmatpush3.bf16.msra.mxu0 %v480_v0  ;;  %472 = vmatpush3.bf16.msra.mxu1 %v480_v0  ;;  %v488_v4 = vld [vmem:[%s584_s0] sm:$0xff]   ;;  %v486_v8 = vld [vmem:[%s583_s1 + $0x8] sm:$0xff]   ;;  %v492_v12 = vld [vmem:[%s584_s0 + $0x10] sm:$0xff]  }
   0x4   :  { %434 = vmatprep.subr.bf16.mxu0 %v481_v1  ;;  %465 = vmatprep.subr.bf16.mxu1 %v481_v1  ;;  %v489_v5 = vld [vmem:[%s584_s0 + $0x20] sm:$0xff]   ;;  %v490_v10 = vld [vmem:[%s584_s0 + $0x8] sm:$0xff]   ;;  %v493_v13 = vld [vmem:[%s584_s0 + $0x30] sm:$0xff]  }
   0x5   :  { %448 = vmatprep.mubr.bf16.mxu0 %v488_v4  ;;  %456 = vmatprep.mubr.bf16.mxu1 %v489_v5  ;;  %v487_v9 = vld [vmem:[%s583_s1] sm:$0xff]   ;;  %v491_v11 = vld [vmem:[%s584_s0 + $0x28] sm:$0xff]   ;;  %v494_v14 = vld [vmem:[%s584_s0 + $0x18] sm:$0xff]  }
   0x6   :  { %v495_v15 = vld [vmem:[%s584_s0 + $0x38] sm:$0xff]  }
   0x7   :  { %435 = vmatpush3.bf16.msra.mxu0 %v481_v1  ;;  %473 = vmatpush3.bf16.msra.mxu1 %v481_v1 }
   0x8   :  { %436 = vmatprep.subr.bf16.mxu0 %v482_v2  ;;  %466 = vmatprep.subr.bf16.mxu1 %v482_v2 }
   0xb   :  { %437 = vmatpush3.bf16.msra.mxu0 %v482_v2  ;;  %474 = vmatpush3.bf16.msra.mxu1 %v482_v2 }
   0xc   :  { %438 = vmatprep.subr.bf16.mxu0 %v483_v3  ;;  %467 = vmatprep.subr.bf16.mxu1 %v483_v3 }
   0xf   :  { %439 = vmatpush3.bf16.msra.mxu0 %v483_v3  ;;  %475 = vmatpush3.bf16.msra.mxu1 %v483_v3 }
  0x10   :  { %440 = vmatprep.subr.bf16.mxu0 %v484_v6  ;;  %468 = vmatprep.subr.bf16.mxu1 %v484_v6 }
  0x13   :  { %441 = vmatpush3.bf16.msra.mxu0 %v484_v6  ;;  %476 = vmatpush3.bf16.msra.mxu1 %v484_v6 }
  0x14   :  { %442 = vmatprep.subr.bf16.mxu0 %v485_v7  ;;  %469 = vmatprep.subr.bf16.mxu1 %v485_v7 }
  0x17   :  { %443 = vmatpush3.bf16.msra.mxu0 %v485_v7  ;;  %477 = vmatpush3.bf16.msra.mxu1 %v485_v7 }
  0x18   :  { %444 = vmatprep.subr.bf16.mxu0 %v486_v8  ;;  %470 = vmatprep.subr.bf16.mxu1 %v486_v8 }
  0x1b   :  { %445 = vmatpush3.bf16.msra.mxu0 %v486_v8  ;;  %478 = vmatpush3.bf16.msra.mxu1 %v486_v8 }
  0x1c   :  { %446 = vmatprep.subr.bf16.mxu0 %v487_v9  ;;  %471 = vmatprep.subr.bf16.mxu1 %v487_v9 }
  0x1f   :  { %447 = vmatpush3.bf16.msra.mxu0 %v487_v9  ;;  %479 = vmatpush3.bf16.msra.mxu1 %v487_v9 }
  0x22   :  { %449 = vmatmul.mubr.bf16.vlgmr.msra.gmra.mxu0 %v490_v10  ;;  %457 = vmatmul.mubr.bf16.vlgmr.msra.gmra.mxu1 %v491_v11 }
  0x23   :  { %452 = vmatprep.mubr.bf16.mxu0 %v492_v12  ;;  %460 = vmatprep.mubr.bf16.mxu1 %v493_v13 }
  0x2a   :  { %453 = vmatmul.mubr.bf16.gmra.mxu0 %v494_v14  ;;  %461 = vmatmul.mubr.bf16.gmra.mxu1 %v495_v15 }
  0xe2   :  { %v450_v16 = vpop.f32.mrf.mxu0  ;;  %v458_v17 = vpop.f32.mrf.mxu1 }
  0xe4   :  { %v174_v18 = vpop.f32.mrf.mxu0  ;;  %v206_v19 = vpop.f32.mrf.mxu1 }
  0xe6   :  { %v451_v20 = vpop.f32.mrf.mxu0  ;;  %v459_v21 = vpop.f32.mrf.mxu1 }
  0xe7   :  { %v377_v22 = vpack.c.bf16 %v451_v20, %v450_v16  ;;  %v397_v23 = vpack.c.bf16 %v459_v21, %v458_v17 }
  0xe8   :  { %v177_v24 = vpop.f32.mrf.mxu0  ;;  %v209_v25 = vpop.f32.mrf.mxu1 }
  0xe9   :  { %409 = vst [vmem:[%s585_s2 + $0x8] sm:$0xff] %v377_v22   ;;  %413 = vst [vmem:[%s585_s2 + $0x28] sm:$0xff] %v397_v23   ;;  %v372_v26 = vpack.c.bf16 %v177_v24, %v174_v18  ;;  %v392_v27 = vpack.c.bf16 %v209_v25, %v206_v19 }
  0xea   :  { %v454_v28 = vpop.f32.mrf.mxu0  ;;  %v462_v29 = vpop.f32.mrf.mxu1 }
  0xeb   :  { %373 = vst [vmem:[%s585_s2] sm:$0xff] %v372_v26   ;;  %412 = vst [vmem:[%s585_s2 + $0x20] sm:$0xff] %v392_v27  }
  0xec   :  { %v190_v30 = vpop.f32.mrf.mxu0  ;;  %v222_v31 = vpop.f32.mrf.mxu1 }
  0xee   :  { %v455_v32 = vpop.f32.mrf.mxu0  ;;  %v463_v33 = vpop.f32.mrf.mxu1 }
  0xef   :  { %v387_v34 = vpack.c.bf16 %v455_v32, %v454_v28  ;;  %v407_v35 = vpack.c.bf16 %v463_v33, %v462_v29 }
  0xf0   :  { %v193_v36 = vpop.f32.mrf.mxu0  ;;  %v225_v37 = vpop.f32.mrf.mxu1 }
  0xf1   :  { %411 = vst [vmem:[%s585_s2 + $0x18] sm:$0xff] %v387_v34   ;;  %415 = vst [vmem:[%s585_s2 + $0x38] sm:$0xff] %v407_v35   ;;  %v382_v38 = vpack.c.bf16 %v193_v36, %v190_v30  ;;  %v402_v39 = vpack.c.bf16 %v225_v37, %v222_v31 }
  0xf3   :  { %410 = vst [vmem:[%s585_s2 + $0x10] sm:$0xff] %v382_v38   ;;  %414 = vst [vmem:[%s585_s2 + $0x30] sm:$0xff] %v402_v39  }

// kernel: gcn_stack_forward.3
= control target key start
LH: loop header
LB: loop body
LE: loop exit
PB: predicated region body
PF: predicated region fallthrough
CT: control target
= control target key end

     0   :  { %s733_s15 = smov 0   ;;  %s735_s16 = smov 0   ;;  %s832_s0 = inlined_call_operand.vmem [shape: bf16[64,128], index: 0, kind: input, shape index: {}]   ;;  %s833_s1 = inlined_call_operand.vmem [shape: bf16[128,128], index: 1, kind: input, shape index: {}]   ;;  %s834_s2 = inlined_call_operand.vmem [shape: f32[1,128], index: 2, kind: input, shape index: {}]   ;;  %s835_s3 = inlined_call_operand.vmem [shape: f32[64,128], index: 3, kind: output, shape index: {0}]   ;;  %s836_s4 = inlined_call_operand.vmem [shape: f32[64,128], index: 4, kind: output, shape index: {1}]  }
   0x1   :  { %s737_s17 = smov 0  }
   0x2 LB: > { %s27_s18 = sadd.s32 1, %s701_s16  ;;  %p582_p0 = scmp.ge.s32.totalorder %s705_s17, 1  ;;  %s705_s17 = sphi %s737_s17, %s15_s17   ;;  %s701_s16 = sphi %s735_s16, %s838_s16   ;;  %s697_s15 = sphi %s733_s15, %s837_s15  }
   0x3   : > { %p29_p1 = scmp.ge.s32.totalorder %s27_s18, 2  ;;  %p183_p2 = scmp.lt.s32.totalorder %s705_s17, 3 }
   0x5   : > { %s840_s18 = smov (%p29_p1, %s27_s18), 0  ;;  %p184_p3 = pnand %p582_p0, %p183_p2 }
   0x6   : > { %s583_s21 = sshll.u32 (!%p184_p3), %s697_s15, 2 }
   0x7   : > { %187 = sbr.rel (%p184_p3) target bundleno = 577 (0x241), region = 32  ;;  %p218_p4 = scmp.lt.s32.totalorder (!%p184_p3), %s583_s21, 7 }
   0xc   : > { %v657_v0 = vld [vmem:[%s833_s1 + $0x38] sm:$0xff]   ;;  %v658_v1 = vld [vmem:[%s833_s1 + $0x30] sm:$0xff]   ;;  %s842_s21 = smov (!%p218_p4, %s583_s21), 7  ;;  %v659_v2 = vld [vmem:[%s833_s1 + $0x28] sm:$0xff]   ;;  %v707_v5 = vmov 0.0   ;;  %v419_v21 = vlaneseq }
   0xd   : > { %612 = vmatprep.subr.bf16.mxu0 %v657_v0  ;;  %s584_s26 = sshll.u32 %s842_s21, 2  ;;  %s586_s30 = sshll.u32 %s842_s21, 3  ;;  %v660_v3 = vld [vmem:[%s833_s1 + $0x20] sm:$0xff]   ;;  %v661_v6 = vld [vmem:[%s833_s1 + $0x18] sm:$0xff]   ;;  %v662_v7 = vld [vmem:[%s833_s1 + $0x10] sm:$0xff]  }
   0xe   : > { %613 = vmatpush3.bf16.msra.mxu0 %v657_v0  ;;  %s224_s29 = scalar_lea.vmem %s832_s0, %s584_s26  ;;  %s775_s9 = scalar_lea.vmem %s835_s3, %s586_s30  ;;  %v663_v8 = vld [vmem:[%s833_s1 + $0x8] sm:$0xff]   ;;  %v664_v9 = vld [vmem:[%s833_s1] sm:$0xff]   ;;  %v420_v24 = vand.u32 127, %v419_v21 }
   0xf   : > { %614 = vmatprep.subr.bf16.mxu0 %v658_v1  ;;  %v665_v4 = vld [vmem:[%s224_s29] sm:$0xff]   ;;  %243 = vst [vmem:[%s775_s9] sm:$0xff] %v707_v5  ;;  %244 = vst [vmem:[%s775_s9 + $0x8] sm:$0xff] %v707_v5  ;;  %v666_v10 = vld [vmem:[%s224_s29 + $0x8] sm:$0xff]   ;;  %s236_s26 = scalar_lea.vmem %s836_s4, %s586_s30 }
  0x10   : > { %628 = vmatprep.mubr.bf16.mxu0 %v665_v4  ;;  %245 = vst [vmem:[%s775_s9 + $0x10] sm:$0xff] %v707_v5  ;;  %246 = vst [vmem:[%s775_s9 + $0x18] sm:$0xff] %v707_v5  ;;  %v599_v22 = vld [vmem:[%s834_s2] ss:$0 sm:$0xff]  ;;  %vm421_vm0 = vcmp.lt.s32.totalorder %v420_v24, 32 }
  0x12   : > { %615 = vmatpush3.bf16.msra.mxu0 %v658_v1 }
  0x13   : > { %616 = vmatprep.subr.bf16.mxu0 %v659_v2 }
  0x16   : > { %617 = vmatpush3.bf16.msra.mxu0 %v659_v2  ;;  %v268_v12 = vld [vmem:[%s775_s9] sm:$0xff]  ;;  %v269_v14 = vld [vmem:[%s775_s9 + $0x8] sm:$0xff] }
  0x17   : > { %618 = vmatprep.subr.bf16.mxu0 %v660_v3  ;;  %v270_v16 = vld [vmem:[%s775_s9 + $0x10] sm:$0xff] }
  0x1a   : > { %619 = vmatpush3.bf16.msra.mxu0 %v660_v3 }
  0x1b   : > { %620 = vmatprep.subr.bf16.mxu0 %v661_v6 }
  0x1e   : > { %621 = vmatpush3.bf16.msra.mxu0 %v661_v6 }
  0x1f   : > { %622 = vmatprep.subr.bf16.mxu0 %v662_v7 }
  0x22   : > { %623 = vmatpush3.bf16.msra.mxu0 %v662_v7 }
  0x23   : > { %624 = vmatprep.subr.bf16.mxu0 %v663_v8 }
  0x26   : > { %625 = vmatpush3.bf16.msra.mxu0 %v663_v8 }
  0x27   : > { %626 = vmatprep.subr.bf16.mxu0 %v664_v9 }
  0x2a   : > { %627 = vmatpush3.bf16.msra.mxu0 %v664_v9 }
  0x2d   : > { %629 = vmatmul.mubr.bf16.vlgmr.msra.gmra.mxu0 %v666_v10 }
  0xed   : > { %v630_v11 = vpop.f32.mrf.mxu0 }
  0xee   : > { %v387_v20 = vadd.f32 %v630_v11, %v270_v16 }
  0xef   : > { %v370_v13 = vpop.f32.mrf.mxu0 }
  0xf0   : > { %v385_v15 = vadd.f32 %v370_v13, %v268_v12  ;;  %391 = vst [vmem:[%s775_s9 + $0x10] sm:$0xff] %v387_v20 }
  0xf1   : > { %v631_v17 = vpop.f32.mrf.mxu0 }
  0xf2   : > { %389 = vst [vmem:[%s775_s9] sm:$0xff] %v385_v15  ;;  %392 = vst [vmem:[%s775_s9 + $0x18] sm:$0xff] %v631_v17  ;;  %v410_v29 = vadd.f32 %v631_v17, %v599_v22 }
  0xf3   : > { %v373_v18 = vpop.f32.mrf.mxu0 }
  0xf4   : > { %v386_v19 = vadd.f32 %v373_v18, %v269_v14  ;;  %v418_v35 = vmax.f32 %v410_v29, 0.0  ;;  %414 = vst [vmem:[%s775_s9 + $0x18] sm:$0xff] %v410_v29 }
  0xf6   : > { %390 = vst [vmem:[%s775_s9 + $0x8] sm:$0xff] %v386_v19  ;;  %v425_v37 = vsel %vm421_vm0, %v418_v35, -1e+30 }
  0xf7   : > { %v398_v23 = vld [vmem:[%s775_s9 + $0x10] sm:$0xff] }
  0xf8   : > { %v409_v27 = vadd.f32 %v599_v22, %v398_v23 }
  0xf9   : > { %v396_v25 = vld [vmem:[%s775_s9] sm:$0xff] }
  0xfa   : > { %v407_v28 = vadd.f32 %v599_v22, %v396_v25  ;;  %v417_v31 = vmax.f32 %v409_v27, 0.0  ;;  %413 = vst [vmem:[%s775_s9 + $0x10] sm:$0xff] %v409_v27 }
  0xfc   : > { %v415_v32 = vmax.f32 %v407_v28, 0.0  ;;  %411 = vst [vmem:[%s775_s9] sm:$0xff] %v407_v28  ;;  %v424_v33 = vsel %vm421_vm0, %v417_v31, -1e+30 }
  0xfd   : > { %v397_v26 = vld [vmem:[%s775_s9 + $0x8] sm:$0xff]  ;;  %430 = vmax.xlane.f32.xlu1 %v424_v33 }
  0xfe   : > { %v408_v30 = vadd.f32 %v599_v22, %v397_v26  ;;  %v422_v34 = vsel %vm421_vm0, %v415_v32, -1e+30 }
  0xff   : > { %426 = vmax.xlane.f32.xlu0 %v422_v34 }
 0x100   : > { %412 = vst [vmem:[%s775_s9 + $0x8] sm:$0xff] %v408_v30  ;;  %v416_v36 = vmax.f32 %v408_v30, 0.0 }
 0x101   : > { %432 = vmax.xlane.f32.xlu1 %v425_v37 }
 0x102   : > { %v423_v38 = vsel %vm421_vm0, %v416_v36, -1e+30 }
 0x103   : > { %428 = vmax.xlane.f32.xlu0 %v423_v38 }
 0x186   : > { %v431_v39 = vpop.xlane.xlu1 %430 }
 0x187   : > { %v436_v41 = vsub.f32 %v417_v31, %v431_v39 }
 0x188   : > { %v427_v40 = vpop.xlane.xlu0 %426 }
 0x189   : > { %v434_v42 = vsub.f32 %v415_v32, %v427_v40  ;;  %v442_v44 = vmul.f32 1.442695, %v436_v41 }
 0x18a   : > { %v433_v45 = vpop.xlane.xlu1 %432 }
 0x18b   : > { %v438_v43 = vmul.f32 1.442695, %v434_v42  ;;  %v437_v47 = vsub.f32 %v418_v35, %v433_v45 }
 0x18c   : > { %v429_v46 = vpop.xlane.xlu0 %428 }
 0x18d   : > { %v435_v48 = vsub.f32 %v416_v36, %v429_v46  ;;  %667 = vpow2.f32 %v438_v43  ;;  %v444_v50 = vmul.f32 1.442695, %v437_v47 }
 0x18e   : > { %669 = vpow2.f32 %v442_v44 }
 0x18f   : > { %v440_v49 = vmul.f32 1.442695, %v435_v48 }
 0x191   : > { %671 = vpow2.f32 %v440_v49 }
 0x192   : > { %673 = vpow2.f32 %v444_v50 }
 0x19a   : > { %v668_v51 = vpop.eup %667 }
 0x19b   : > { %v446_v52 = vsel %vm421_vm0, %v668_v51, 0.0  ;;  %v670_v53 = vpop.eup %669 }
 0x19c   : > { %450 = vadd.xlane.f32.xlu0 %v446_v52  ;;  %v448_v55 = vsel %vm421_vm0, %v670_v53, 0.0 }
 0x19e   : > { %v672_v54 = vpop.eup %671 }
 0x19f   : > { %v447_v56 = vsel %vm421_vm0, %v672_v54, 0.0  ;;  %v674_v57 = vpop.eup %673 }
 0x1a0   : > { %454 = vadd.xlane.f32.xlu0 %v448_v55  ;;  %452 = vadd.xlane.f32.xlu1 %v447_v56  ;;  %v449_v58 = vsel %vm421_vm0, %v674_v57, 0.0 }
 0x1a4   : > { %456 = vadd.xlane.f32.xlu1 %v449_v58 }
 0x225   : > { %v451_v59 = vpop.xlane.xlu0 %450 }
 0x226   : > { %675 = vlog2.f32 %v451_v59 }
 0x229   : > { %v453_v60 = vpop.xlane.xlu1 %452  ;;  %v455_v61 = vpop.xlane.xlu0 %454 }
 0x22a   : > { %677 = vlog2.f32 %v453_v60 }
 0x22b   : > { %679 = vlog2.f32 %v455_v61 }
 0x22d   : > { %v457_v62 = vpop.xlane.xlu1 %456 }
 0x22e   : > { %681 = vlog2.f32 %v457_v62 }
 0x233   : > { %v676_v63 = vpop.eup %675 }
 0x234   : > { %v459_v0 = vmul.f32 0.6931472, %v676_v63 }
 0x236   : > { %v466_v1 = vsub.f32 %v434_v42, %v459_v0 }
 0x237   : > { %v678_v2 = vpop.eup %677 }
 0x238   : > { %v680_v3 = vpop.eup %679  ;;  %470 = vst [vmem:[%s236_s26] sm:$0xff] %v466_v1  ;;  %v461_v4 = vmul.f32 0.6931472, %v678_v2 }
 0x239   : > { %v463_v5 = vmul.f32 0.6931472, %v680_v3 }
 0x23a   : > { %v467_v6 = vsub.f32 %v435_v48, %v461_v4 }
 0x23b   : > { %v682_v7 = vpop.eup %681  ;;  %v468_v8 = vsub.f32 %v436_v41, %v463_v5 }
 0x23c   : > { %471 = vst [vmem:[%s236_s26 + $0x8] sm:$0xff] %v467_v6  ;;  %v465_v9 = vmul.f32 0.6931472, %v682_v7 }
 0x23d   : > { %472 = vst [vmem:[%s236_s26 + $0x10] sm:$0xff] %v468_v8 }
 0x23e   : > { %v469_v10 = vsub.f32 %v437_v47, %v465_v9 }
 0x240   : > { %473 = vst [vmem:[%s236_s26 + $0x18] sm:$0xff] %v469_v10 }
 0x241 PF: > { %s15_s17 = sadd.s32 1, %s705_s17   ;;  %s837_s15 = smov %s701_s16 }
 0x242   : > { %p12_p5 = scmp.ge.s32.totalorder %s15_s17, 4   ;;  %s838_s16 = smov %s840_s18 }
 0x244   :  { %14 = sbr.rel (!%p12_p5) target bundleno = 2 (0x2), region = 83 }

</bundles_post_ra>
